<compile_context>
chip_gen: v7x
topology: tpu7x:2x2x1
jax: 0.10.0
libtpu: 0.0.40
codegen_flags: <defaults>
</compile_context>

<pallas_src>
import math
from functools import partial

import jax
import jax.numpy as jnp
from jax import lax
from jax.experimental import pallas as pl
from jax.experimental.pallas import tpu as pltpu


def _self_attention_kernel(x_ref, wqkv_ref, wo_ref, o_ref, acc_ref,
                           *, S, Dh, masked):
    """One grid step = (batch b, head h).

    x_ref    : (1, S, E)    f32   -- batch b's activations
    wqkv_ref : (1, E, 3*Dh) bf16  -- head h's fused [Wq*scale | Wk | Wv] columns
    wo_ref   : (Dh, E)      bf16  -- head h's rows of Wo
    o_ref    : (1, S, E)    f32   -- batch b's output (written at last head)
    acc_ref  : (1, S, E)    f32   -- VMEM accumulator over heads
    """
    bf16 = jnp.bfloat16
    f32 = jnp.float32

    h = pl.program_id(1)
    nh = pl.num_programs(1)

    @pl.when(h == 0)
    def _():
        acc_ref[...] = jnp.zeros_like(acc_ref)

    x = x_ref[0].astype(bf16)                        # (S, E)
    w = wqkv_ref[0]                                  # (E, 3*Dh) bf16, Wq pre-scaled

    # --- head-h projection: ONE MXU call, bf16 operands, f32 accumulation.
    qkv = jnp.dot(x, w, preferred_element_type=f32)  # (S, 3*Dh)

    q = qkv[:, 0:Dh]                                 # already scaled by 1/sqrt(Dh)
    k = qkv[:, Dh:2 * Dh]
    v = qkv[:, 2 * Dh:3 * Dh]

    # --- scores: q @ k^T via dot_general (contract last dims), f32 accumulation.
    s = lax.dot_general(q.astype(bf16), k.astype(bf16),
                        dimension_numbers=(((1,), (1,)), ((), ())),
                        preferred_element_type=f32)  # (S, S)

    # --- additive causal mask, built from 2-D iotas, applied post-matmul in f32.
    if masked:
        row = lax.broadcasted_iota(jnp.int32, (S, S), 0)
        col = lax.broadcasted_iota(jnp.int32, (S, S), 1)
        s = s + jnp.where(col > row, -1e30, 0.0).astype(f32)

    # --- numerically stable softmax in f32; EUP reciprocal instead of a divide.
    m = jnp.max(s, axis=-1, keepdims=True)
    p = jnp.exp(s - m)
    p = p * pl.reciprocal(jnp.sum(p, axis=-1, keepdims=True), approx=True)

    # --- context for this head, then its additive contribution to the output
    #     projection: out += ctx_h @ Wo[h*Dh:(h+1)*Dh, :].
    ctx = jnp.dot(p.astype(bf16), v.astype(bf16),
                  preferred_element_type=f32)        # (S, Dh)
    out_h = jnp.dot(ctx.astype(bf16), wo_ref[...],
                    preferred_element_type=f32)      # (S, E)

    acc_ref[...] += out_h[None]

    @pl.when(h == nh - 1)
    def _():
        o_ref[...] = acc_ref[...].astype(o_ref.dtype)


def prepare_weights(wq, wk, wv, wo, *, num_heads):
    """One-time (init-time) weight packing: per-head fused QKV weight (bf16) with
    the 1/sqrt(Dh) attention scale folded into the Wq columns, plus bf16 Wo."""
    E = wq.shape[0]
    Dh = E // num_heads
    scale = 1.0 / math.sqrt(Dh)
    # column e_out of Wq/Wk/Wv maps to (head, dim) = (e_out // Dh, e_out % Dh)
    wq_h = (wq * scale).reshape(E, num_heads, Dh).transpose(1, 0, 2)  # (H, E, Dh)
    wk_h = wk.reshape(E, num_heads, Dh).transpose(1, 0, 2)            # (H, E, Dh)
    wv_h = wv.reshape(E, num_heads, Dh).transpose(1, 0, 2)            # (H, E, Dh)
    wqkv_heads = jnp.concatenate([wq_h, wk_h, wv_h], axis=-1)         # (H, E, 3*Dh)
    return wqkv_heads.astype(jnp.bfloat16), wo.astype(jnp.bfloat16)


def self_attention_pallas(x, wqkv_heads, wo_bf16, *, num_heads, masked=False):
    B, S, E = x.shape
    assert E % num_heads == 0
    Dh = E // num_heads

    kernel = partial(_self_attention_kernel, S=S, Dh=Dh, masked=masked)

    out = pl.pallas_call(
        kernel,
        out_shape=jax.ShapeDtypeStruct((B, S, E), x.dtype),
        grid=(B, num_heads),
        in_specs=[
            pl.BlockSpec((1, S, E), lambda b, h: (b, 0, 0)),        # x, per batch
            pl.BlockSpec((1, E, 3 * Dh), lambda b, h: (h, 0, 0)),   # fused W, per head
            pl.BlockSpec((Dh, E), lambda b, h: (h, 0)),             # Wo rows, per head
        ],
        out_specs=pl.BlockSpec((1, S, E), lambda b, h: (b, 0, 0)),
        scratch_shapes=[pltpu.VMEM((1, S, E), jnp.float32)],
        compiler_params=pltpu.CompilerParams(
            dimension_semantics=("parallel", "arbitrary")),
    )(x, wqkv_heads, wo_bf16)
    return out


def self_attention_ref(x, wq, wk, wv, wo, *, num_heads, masked=False):
    """Pure-JAX (f32) reference mirroring the PyTorch forward."""
    B, S, E = x.shape
    Dh = E // num_heads
    q = (x @ wq).reshape(B, S, num_heads, Dh).transpose(0, 2, 1, 3)
    k = (x @ wk).reshape(B, S, num_heads, Dh).transpose(0, 2, 1, 3)
    v = (x @ wv).reshape(B, S, num_heads, Dh).transpose(0, 2, 1, 3)
    s = jnp.einsum("bhqd,bhkd->bhqk", q, k) / math.sqrt(Dh)
    if masked:
        mask = jnp.triu(jnp.ones((S, S), dtype=bool), k=1)[None, None]
        s = jnp.where(mask, -jnp.inf, s)
    p = jax.nn.softmax(s, axis=3)
    ctx = jnp.einsum("bhqk,bhkd->bhqd", p, v).transpose(0, 2, 1, 3).reshape(B, S, E)
    return ctx @ wo


if __name__ == "__main__":
    # Small shapes consistent with the module: batch=2, seq=8, embedding_dim=32, heads=4
    B, S, E, H = 2, 8, 32, 4

    key = jax.random.PRNGKey(0)
    kx, kq, kk, kv, ko = jax.random.split(key, 5)

    x = jax.random.normal(kx, (B, S, E), dtype=jnp.float32)
    bound = 1.0 / math.sqrt(E)   # roughly nn.Linear's default init scale
    wq = jax.random.uniform(kq, (E, E), jnp.float32, -bound, bound)
    wk = jax.random.uniform(kk, (E, E), jnp.float32, -bound, bound)
    wv = jax.random.uniform(kv, (E, E), jnp.float32, -bound, bound)
    wo = jax.random.uniform(ko, (E, E), jnp.float32, -bound, bound)

    # One-time weight fusion + bf16 cast (hoisted out of the per-call hot path).
    wqkv_heads, wo_bf16 = prepare_weights(wq, wk, wv, wo, num_heads=H)

    # unmasked (module default)
    out = self_attention_pallas(x, wqkv_heads, wo_bf16, num_heads=H, masked=False)
    out = jax.block_until_ready(out)
    ref = self_attention_ref(x, wq, wk, wv, wo, num_heads=H, masked=False)
    assert out.shape == (B, S, E)
    # bf16 MXU operands with f32 accumulation -> compare at bf16-level tolerance
    assert jnp.allclose(out, ref, atol=5e-2, rtol=5e-2), "mismatch (unmasked)"

    # causal path
    out_m = self_attention_pallas(x, wqkv_heads, wo_bf16, num_heads=H, masked=True)
    out_m = jax.block_until_ready(out_m)
    ref_m = self_attention_ref(x, wq, wk, wv, wo, num_heads=H, masked=True)
    assert jnp.allclose(out_m, ref_m, atol=5e-2, rtol=5e-2), "mismatch (masked)"

    print("KERNEL_OK")
</pallas_src>

<mosaic_0001>
module attributes {stable_mosaic.version = 11 : i64} {
  func.func @_self_attention_kernel(%arg0: i32, %arg1: i32, %arg2: memref<1x8x32xf32, #tpu.memory_space<vmem>>, %arg3: memref<1x32x24xbf16, #tpu.memory_space<vmem>>, %arg4: memref<8x32xbf16, #tpu.memory_space<vmem>>, %arg5: memref<1x8x32xf32, #tpu.memory_space<vmem>>, %arg6: memref<1x8x32xf32, #tpu.memory_space<vmem>>) attributes {dimension_semantics = [#tpu.dimension_semantics<parallel>, #tpu.dimension_semantics<arbitrary>], iteration_bounds = array<i64: 2, 4>, scalar_prefetch = 0 : i64, scratch_operands = 1 : i64, tpu.core_type = #tpu.core_type<tc>, window_params = [{transform_indices = @transform_0, window_bounds = array<i64: 1, 8, 32>}, {transform_indices = @transform_1, window_bounds = array<i64: 1, 32, 24>}, {transform_indices = @transform_2, window_bounds = array<i64: 8, 32>}, {transform_indices = @transform_3, window_bounds = array<i64: 1, 8, 32>}]} {
    %c0_i32 = arith.constant 0 : i32
    %0 = arith.cmpi eq, %arg1, %c0_i32 : i32
    %1 = arith.extui %0 : i1 to i32
    %c0_i32_0 = arith.constant 0 : i32
    %2 = arith.cmpi ne, %1, %c0_i32_0 : i32
    scf.if %2 {
      %cst_20 = arith.constant 0.000000e+00 : f32
      %38 = vector.broadcast %cst_20 : f32 to vector<1x8x32xf32>
      %c0_21 = arith.constant 0 : index
      %c0_22 = arith.constant 0 : index
      %c0_23 = arith.constant 0 : index
      %39 = vector.load %arg6[%c0_21, %c0_22, %c0_23] : memref<1x8x32xf32, #tpu.memory_space<vmem>>, vector<1x8x32xf32>
      tpu.vector_store %arg6[%c0_21, %c0_22, %c0_23], %38 {strides = array<i32>} : memref<1x8x32xf32, #tpu.memory_space<vmem>>, vector<1x8x32xf32>,
    } else {
    }
    %c0 = arith.constant 0 : index
    %c0_1 = arith.constant 0 : index
    %c0_2 = arith.constant 0 : index
    %3 = vector.load %arg2[%c0, %c0_1, %c0_2] : memref<1x8x32xf32, #tpu.memory_space<vmem>>, vector<1x8x32xf32>
    %4 = vector.shape_cast %3 : vector<1x8x32xf32> to vector<8x32xf32>
    %5 = arith.truncf %4 : vector<8x32xf32> to vector<8x32xbf16>
    %c0_3 = arith.constant 0 : index
    %c0_4 = arith.constant 0 : index
    %c0_5 = arith.constant 0 : index
    %6 = vector.load %arg3[%c0_3, %c0_4, %c0_5] : memref<1x32x24xbf16, #tpu.memory_space<vmem>>, vector<1x32x24xbf16>
    %7 = vector.shape_cast %6 : vector<1x32x24xbf16> to vector<32x24xbf16>
    %cst = arith.constant dense<0.000000e+00> : vector<8x24xf32>
    %8 = tpu.matmul %5, %7, %cst {dimension_numbers = #tpu.dot_dimension_numbers<[1], [0], [0], [1], [0, 0, 1, 1], [], []>} : vector<8x32xbf16>, vector<32x24xbf16>, vector<8x24xf32> -> vector<8x24xf32>
    %9 = vector.extract_strided_slice %8 {offsets = [0, 0], sizes = [8, 8], strides = [1, 1]} : vector<8x24xf32> to vector<8x8xf32>
    %10 = vector.extract_strided_slice %8 {offsets = [0, 8], sizes = [8, 8], strides = [1, 1]} : vector<8x24xf32> to vector<8x8xf32>
    %11 = vector.extract_strided_slice %8 {offsets = [0, 16], sizes = [8, 8], strides = [1, 1]} : vector<8x24xf32> to vector<8x8xf32>
    %12 = arith.truncf %9 : vector<8x8xf32> to vector<8x8xbf16>
    %13 = arith.truncf %10 : vector<8x8xf32> to vector<8x8xbf16>
    %cst_6 = arith.constant dense<0.000000e+00> : vector<8x8xf32>
    %14 = tpu.matmul %12, %13, %cst_6 {dimension_numbers = #tpu.dot_dimension_numbers<[1], [1], [0], [0], [0, 0, 1, 0], [], []>} : vector<8x8xbf16>, vector<8x8xbf16>, vector<8x8xf32> -> vector<8x8xf32>
    %cst_7 = arith.constant dense<0xFF800000> : vector<8xf32>
    %15 = vector.multi_reduction <maximumf>, %14, %cst_7 [1] : vector<8x8xf32> to vector<8xf32>
    %16 = vector.shape_cast %15 : vector<8xf32> to vector<8x1xf32>
    %17 = vector.broadcast %16 : vector<8x1xf32> to vector<8x8xf32>
    %18 = arith.subf %14, %17 : vector<8x8xf32>
    %19 = math.exp %18 : vector<8x8xf32>
    %cst_8 = arith.constant dense<0.000000e+00> : vector<8xf32>
    %20 = vector.multi_reduction <add>, %19, %cst_8 [1] : vector<8x8xf32> to vector<8xf32>
    %21 = vector.shape_cast %20 : vector<8xf32> to vector<8x1xf32>
    %22 = tpu.reciprocal %21 {approx = true} : vector<8x1xf32> -> vector<8x1xf32>
    %23 = vector.broadcast %22 : vector<8x1xf32> to vector<8x8xf32>
    %24 = arith.mulf %19, %23 : vector<8x8xf32>
    %25 = arith.truncf %24 : vector<8x8xf32> to vector<8x8xbf16>
    %26 = arith.truncf %11 : vector<8x8xf32> to vector<8x8xbf16>
    %cst_9 = arith.constant dense<0.000000e+00> : vector<8x8xf32>
    %27 = tpu.matmul %25, %26, %cst_9 {dimension_numbers = #tpu.dot_dimension_numbers<[1], [0], [0], [1], [0, 0, 1, 1], [], []>} : vector<8x8xbf16>, vector<8x8xbf16>, vector<8x8xf32> -> vector<8x8xf32>
    %28 = arith.truncf %27 : vector<8x8xf32> to vector<8x8xbf16>
    %c0_10 = arith.constant 0 : index
    %c0_11 = arith.constant 0 : index
    %29 = vector.load %arg4[%c0_10, %c0_11] : memref<8x32xbf16, #tpu.memory_space<vmem>>, vector<8x32xbf16>
    %cst_12 = arith.constant dense<0.000000e+00> : vector<8x32xf32>
    %30 = tpu.matmul %28, %29, %cst_12 {dimension_numbers = #tpu.dot_dimension_numbers<[1], [0], [0], [1], [0, 0, 1, 1], [], []>} : vector<8x8xbf16>, vector<8x32xbf16>, vector<8x32xf32> -> vector<8x32xf32>
    %c0_13 = arith.constant 0 : index
    %c0_14 = arith.constant 0 : index
    %c0_15 = arith.constant 0 : index
    %31 = vector.load %arg6[%c0_13, %c0_14, %c0_15] : memref<1x8x32xf32, #tpu.memory_space<vmem>>, vector<1x8x32xf32>
    %32 = vector.shape_cast %30 : vector<8x32xf32> to vector<1x8x32xf32>
    %33 = arith.addf %31, %32 : vector<1x8x32xf32>
    %c0_16 = arith.constant 0 : index
    %c0_17 = arith.constant 0 : index
    %c0_18 = arith.constant 0 : index
    %34 = vector.load %arg6[%c0_16, %c0_17, %c0_18] : memref<1x8x32xf32, #tpu.memory_space<vmem>>, vector<1x8x32xf32>
    tpu.vector_store %arg6[%c0_16, %c0_17, %c0_18], %33 {strides = array<i32>} : memref<1x8x32xf32, #tpu.memory_space<vmem>>, vector<1x8x32xf32>,
    %c3_i32 = arith.constant 3 : i32
    %35 = arith.cmpi eq, %arg1, %c3_i32 : i32
    %36 = arith.extui %35 : i1 to i32
    %c0_i32_19 = arith.constant 0 : i32
    %37 = arith.cmpi ne, %36, %c0_i32_19 : i32
    scf.if %37 {
      %c0_20 = arith.constant 0 : index
      %c0_21 = arith.constant 0 : index
      %c0_22 = arith.constant 0 : index
      %38 = vector.load %arg6[%c0_20, %c0_21, %c0_22] : memref<1x8x32xf32, #tpu.memory_space<vmem>>, vector<1x8x32xf32>
      %c0_23 = arith.constant 0 : index
      %c0_24 = arith.constant 0 : index
      %c0_25 = arith.constant 0 : index
      %39 = vector.load %arg5[%c0_23, %c0_24, %c0_25] : memref<1x8x32xf32, #tpu.memory_space<vmem>>, vector<1x8x32xf32>
      tpu.vector_store %arg5[%c0_23, %c0_24, %c0_25], %38 {strides = array<i32>} : memref<1x8x32xf32, #tpu.memory_space<vmem>>, vector<1x8x32xf32>,
    } else {
    }
    return
  }
  func.func @transform_0(%arg0: i32, %arg1: i32) -> (i32, i32, i32) {
    %c0_i32 = arith.constant 0 : i32
    %c0_i32_0 = arith.constant 0 : i32
    %c0_i32_1 = arith.constant 0 : i32
    return %arg0, %c0_i32, %c0_i32_0 : i32, i32, i32
  }
  func.func @transform_1(%arg0: i32, %arg1: i32) -> (i32, i32, i32) {
    %c0_i32 = arith.constant 0 : i32
    %c0_i32_0 = arith.constant 0 : i32
    %c0_i32_1 = arith.constant 0 : i32
    return %arg1, %c0_i32, %c0_i32_0 : i32, i32, i32
  }
  func.func @transform_2(%arg0: i32, %arg1: i32) -> (i32, i32) {
    %c0_i32 = arith.constant 0 : i32
    %c0_i32_0 = arith.constant 0 : i32
    return %arg1, %c0_i32 : i32, i32
  }
  func.func @transform_3(%arg0: i32, %arg1: i32) -> (i32, i32, i32) {
    %c0_i32 = arith.constant 0 : i32
    %c0_i32_0 = arith.constant 0 : i32
    %c0_i32_1 = arith.constant 0 : i32
    return %arg0, %c0_i32, %c0_i32_0 : i32, i32, i32
  }
}

</mosaic_0001>

<bundles_post_ra>
// kernel: tpu_custom_call.1
= control target key start
LH: loop header
LB: loop body
LE: loop exit
PB: predicated region body
PF: predicated region fallthrough
CT: control target
= control target key end

     0   :  { %8 = vsyncpa [#allocation4], 0  ;;  %s986_s0 = inlined_call_operand.vmem [shape: f32[2,8,32], index: 0, kind: input, shape index: {}]   ;;  %s987_s1 = inlined_call_operand.vmem [shape: bf16[4,32,24], index: 1, kind: input, shape index: {}]   ;;  %s988_s2 = inlined_call_operand.vmem [shape: bf16[32,32], index: 2, kind: input, shape index: {}]   ;;  %s989_s3 = inlined_call_operand.hbm [shape: f32[2,8,32], index: 3, kind: output, shape index: {}]  }
   0x1   :  { %10 = vsyncpa [#allocation4 + $0x1], 0  ;;  %s823_s12 = smov 0   ;;  %s825_s13 = smov 0  }
   0x2   :  { %s827_s14 = smov 0   ;;  %s829_s15 = smov 0  }
   0x3   :  { %s831_s16 = smov 0   ;;  %s833_s17 = smov 0  }
   0x4   :  { %s835_s18 = smov 0   ;;  %s837_s19 = smov 0  }
   0x5 LB: > { %s561_s20 = sadd.s32 4294967295, %s795_s19   ;;  %s562_s21 = sadd.s32 4294967294, %s795_s19   ;;  %s795_s19 = sphi %s837_s19, %s16_s19   ;;  %s791_s18 = sphi %s835_s18, %s1005_s18   ;;  %s787_s17 = sphi %s833_s17, %s1004_s17   ;;  %s783_s16 = sphi %s831_s16, %s1003_s16   ;;  %s779_s15 = sphi %s829_s15, %s1002_s15   ;;  %s775_s14 = sphi %s827_s14, %s1001_s14   ;;  %s771_s13 = sphi %s825_s13, %s1000_s13   ;;  %s767_s12 = sphi %s823_s12, %s999_s12  }
   0x6   : > { %s25_s22 = sadd.s32 1, %s787_s17  ;;  %s28_s23 = sadd.s32 1, %s791_s18 }
   0x7   : > { %p26_p0 = scmp.ge.s32.totalorder %s25_s22, 4  ;;  %p123_p1 = scmp.ne.s32.totalorder %s775_s14, %s771_s13 }
   0x8   : > { %p124_p2 = scmp.eq.s32.totalorder %s561_s20, 7  ;;  %p129_p4 = scmp.ne.s32.totalorder %s771_s13, %s767_s12 }
   0x9   : > { %s1007_s22 = smov (%p26_p0, %s25_s22), 0  ;;  %s1009_s23 = smov (!%p26_p0, %s28_s23), %s791_s18 }
   0xa   : > { %992 = sst [smem:[#allocation6_spill]] %s1007_s22  ;;  %p872_p3 = por %p124_p2, %p123_p1 }
   0xb   : > { %p30_p5 = scmp.ge.s32.totalorder %s1009_s23, 2  ;;  %p130_p6 = scmp.eq.s32.totalorder %s562_s21, 7 }
   0xc   : > { %p565_p7 = scmp.ge.s32.totalorder %s795_s19, 1  ;;  %p170_p8 = scmp.lt.s32.totalorder %s795_s19, 9 }
   0xd   : > { %s1011_s23 = smov (%p30_p5, %s1009_s23), 0  ;;  %p882_p9 = por %p130_p6, %p129_p4 }
   0xe   : > { %994 = sst [smem:[#allocation7_spill]] %s1011_s23  ;;  %p171_p10 = pnand %p565_p7, %p170_p8 }
   0xf   : > { %s110_s26 = ssub.s32 %s791_s18, %s1011_s23  ;;  %s113_s27 = sadd.s32 1, %s775_s14 }
  0x10   : > { %p111_p11 = scmp.eq.s32.totalorder %s110_s26, 0  ;;  %174 = sbr.rel (%p171_p10) target bundleno = 1368 (0x558), region = 32 }
  0x11   : > { %s991_s29 = sand.u32 (!%p171_p10), 1, %s771_s13   ;;  %p202_p12 = scmp.lt.s32.totalorder (!%p171_p10), %s783_s16, 1 }
  0x12   : > { %s890_s28 = scalar_select %p111_p11, %s775_s14, %s113_s27  }
  0x13   : > { %s896_s30 = sshll.u32 (!%p171_p10), %s991_s29, 3  ;;  %p206_p13 = scmp.lt.s32.totalorder (!%p171_p10), %s779_s15, 3 }
  0x14   : > { %s201_s22 = scalar_lea.vmem (!%p171_p10), [#allocation3], %s896_s30  ;;  %p571_p0 = scmp.ne.s32.totalorder (!%p171_p10), %s779_s15, 0 }
  0x17   : > { %s203_s4 = scalar_select %p202_p12, %s783_s16, 1 }
  0x18   : > { %s207_s5 = scalar_select %p206_p13, %s779_s15, 3 }
  0x19   : > { %s567_s6 = sshll.u32 %s203_s4, 3  ;;  %219 = sbr.rel (%p571_p0) target bundleno = 32 (0x20), region = 36  ;;  %vm220_vm0 = vcmask (!%p571_p0), 261120   ;;  %v797_v0 = vmov (!%p571_p0), 0.0  }
  0x1a   : > { %s205_s9 = scalar_lea.vmem %s986_s0, %s567_s6  ;;  %s583_s10 = sshll.u32 %s207_s5, 4  ;;  %221 = vst.msk [vmem:[#allocation2] sm:$0xff] (!%p571_p0), %vm220_vm0, %v797_v0 }
  0x1b   : > { %s210_s21 = scalar_lea.vmem %s987_s1, %s583_s10  ;;  %s570_s26 = sshll.u32 %s207_s5, 2 }
  0x1c   : > { %s910_s29 = scalar_lea.vmem %s988_s2, %s570_s26 }
  0x20 PF: > { %v695_v1 = vld [vmem:[%s210_s21] sm:$0xff]   ;;  %v798_v2 = vmov 0.0   ;;  %v696_v3 = vld [vmem:[%s210_s21 + $0x8] sm:$0xff]   ;;  %vm799_vm1 = vmmov 0   ;;  %vm240_vm2 = vcmask 261120   ;;  %s800_s23 = smov 120  }
  0x21   : > { %593 = vmatprep.subr.bf16.mxu0 %v798_v2  ;;  %601 = vmatprep.subr.bf16.mxu1 %v798_v2  ;;  %v222_v4 = vld [vmem:[%s205_s9] sm:$0xff]  ;;  %vm288_vm3 = vcmask 64512   ;;  %s801_s4 = smov 112   ;;  %vm352_vm4 = vcmask 1043456   ;;  %p578_p1 = scmp.ne.s32.totalorder %s779_s15, 3 }
  0x22   : > { %594 = vmatpush3.bf16.msra.mxu0 %v695_v1  ;;  %597 = vmatprep.mubr.msk.bf16.mxu0 %vm799_vm1, %v798_v2  ;;  %v223_v5 = vpack.c.bf16 %v222_v4, %v222_v4  ;;  %v397_v23 = vld [vmem:[%s910_s29] sm:$0xf] }
  0x23   : > { %595 = vmatprep.subr.bf16.mxu0 %v798_v2  ;;  %603 = vmatprep.mubr.msk.bf16.mxu1 %vm799_vm1, %v798_v2  ;;  %v402_v24 = vsel %vm352_vm4, %v397_v23, 0  ;;  %v444_v36 = vld [vmem:[#allocation2] sm:$0xff] }
  0x26   : > { %596 = vmatpush3.bf16.msra.mxu0 %v696_v3 }
  0x27   : > { %607 = vmatprep.subr.bf16.mxu0 %v798_v2 }
  0x29   : > { %598 = vmatmul.mubr.msk.bf16.vlgmr.msra.gmra.mrb[0].mxu0 %vm240_vm2, %v223_v5 }
  0x2a   : > { %609 = vmatprep.mubr.msk.bf16.mxu0 %vm799_vm1, %v798_v2 }
  0xfc   : > { %v278_v6 = vpop.f32.mrb[0].mxu0 }
  0xfd   : > { %v284_v7 = vpack.c.bf16 %v278_v6, %v278_v6  ;;  %v599_v8 = vpop.f32.mrb[1].mxu0 }
  0xfe   : > { %v281_v9 = vpop.f32.mrb[2].mxu0 }
  0xff   : > { %286 = vrot.lane.b32.xlu0 %v284_v7, %s800_s23  ;;  %v600_v10 = vpop.f32.mrb[3].mxu0 }
 0x171   : > { %v287_v11 = vpop.permute.xlu0 %286 }
 0x172   : > { %v293_v12 = vsel %vm288_vm3, %v287_v11, 0 }
 0x173   : > { %602 = vmatpush3.bf16.xpose.msra.mxu1 %v293_v12 }
 0x174   : > { %613 = vmatprep.subr.bf16.mxu1 %v798_v2 }
 0x17a   : > { %604 = vmatmul.mubr.msk.bf16.vlgmr.msra.gmra.mrb[0].mxu1 %vm288_vm3, %v284_v7 }
 0x17b   : > { %615 = vmatprep.mubr.msk.bf16.mxu1 %vm799_vm1, %v798_v2  ;;  %614 = vmatpush3.bf16.msra.mxu1 %v402_v24 }
 0x24d   : > { %v329_v13 = vpop.f32.mrb[0].mxu1 }
 0x24e   : > { %v605_v14 = vpop.f32.mrb[1].mxu1  ;;  %v335_v15 = vsel %vm288_vm3, %v329_v13, -inf }
 0x24f   : > { %336 = vmax.xlane.f32.xlu0 %v335_v15  ;;  %v332_v16 = vpop.f32.mrb[2].mxu1 }
 0x250   : > { %v606_v17 = vpop.f32.mrb[3].mxu1 }
 0x2dc   : > { %v337_v18 = vpop.xlane.xlu0 %336 }
 0x2dd   : > { %v338_v19 = vsub.f32 %v329_v13, %v337_v18 }
 0x2df   : > { %v339_v20 = vmul.f32 1.442695, %v338_v19 }
 0x2e1   : > { %697 = vpow2.f32 %v339_v20 }
 0x2eb   : > { %v698_v21 = vpop.eup %697 }
 0x2ec   : > { %v341_v22 = vsel %vm288_vm3, %v698_v21, 0.0 }
 0x2ed   : > { %342 = vadd.xlane.f32.xlu1 %v341_v22 }
 0x2fe   : > { %347 = vrot.lane.b32.xlu1 %v284_v7, %s801_s4 }
 0x37a   : > { %v343_v25 = vpop.xlane.xlu1 %342 }
 0x37b   : > { %699 = vrcp.f32 %v343_v25 }
 0x37e   : > { %v348_v26 = vpop.permute.xlu1 %347 }
 0x37f   : > { %v354_v27 = vsel %vm352_vm4, %v348_v26, 0 }
 0x380   : > { %608 = vmatpush3.bf16.msra.mxu0 %v354_v27 }
 0x385   : > { %v700_v28 = vpop.eup %699 }
 0x386   : > { %v345_v29 = vmul.f32 %v700_v28, %v698_v21 }
 0x388   : > { %v346_v30 = vpack.c.bf16 %v345_v29, %v345_v29 }
 0x38a   : > { %610 = vmatmul.mubr.msk.bf16.vlgmr.msra.gmra.mrb[4].mxu0 %vm288_vm3, %v346_v30 }
 0x45d   : > { %v390_v31 = vpop.f32.mrb[4].mxu0 }
 0x45e   : > { %v396_v32 = vpack.c.bf16 %v390_v31, %v390_v31  ;;  %v611_v33 = vpop.f32.mrb[5].mxu0 }
 0x45f   : > { %v393_v34 = vpop.f32.mrb[6].mxu0 }
 0x460   : > { %v612_v35 = vpop.f32.mrb[7].mxu0  ;;  %616 = vmatmul.mubr.msk.bf16.vlgmr.msra.gmra.mrb[4].mxu1 %vm288_vm3, %v396_v32 }
 0x530   : > { %450 = sbr.rel (%p578_p1) target bundleno = 1343 (0x53f), region = 40 }
 0x533   : > { %v438_v37 = vpop.f32.mrb[4].mxu1 }
 0x534   : > { %v445_v38 = vadd.f32 %v444_v36, %v438_v37  ;;  %v617_v39 = vpop.f32.mrb[5].mxu1 }
 0x535   : > { %v441_v40 = vpop.f32.mrb[6].mxu1 }
 0x536   : > { %446 = vst.msk [vmem:[#allocation2] sm:$0xff] %vm240_vm2, %v445_v38  ;;  %v618_v41 = vpop.f32.mrb[7].mxu1 }
 0x53d   : > { %v451_v42 = vld [vmem:[#allocation2] sm:$0xff] }
 0x53e   : > { %452 = vst.msk [vmem:[%s201_s22] sm:$0xff] %vm240_vm2, %v451_v42 }
 0x53f PF: > { %s580_s29 = sshll.u32 %s783_s16, 7  ;;  %s467_s8 = sshll.u32 %s201_s22, 4  ;;  %s468_s8 = int_to_ptr.vmem [resolvable:$true] %s467_s8 }
 0x540   : > { %s935_s7 = scalar_lea.hbm %s989_s3, %s580_s29  ;;  %s996_s15 = sand.u32 1, %s771_s13  }
 0x541   : > { %s454_s9 = scalar_lea.sflag [#allocation4], %s996_s15  ;;  %s701_s10 = scalar_lea.vmem %s468_s8, 128 }
 0x542   : > { %p702_p2 = scmp.ne.s32.totalorder %s468_s8, %s701_s10  ;;  %s802_s11 = smov [#allocation3]  }
 0x543   : > { %s705_s20 = sshll.u32 %s802_s11, 4  ;;  %s706_s20 = int_to_ptr.vmem [resolvable:$false] %s705_s20 }
 0x544   : > { %p703_p4 = pnand %p702_p2, %p872_p3  ;;  %s707_s21 = scalar_lea.vmem %s706_s20, 256 }
 0x545   : > { %p708_p6 = scmp.lt.s32.totalorder %s468_s8, %s706_s20  ;;  %p709_p7 = scmp.lt.s32.totalorder %s707_s21, %s701_s10 }
 0x546   : > { %p704_p5 = pneg %p703_p4 }
 0x547   : > { %p710_p8 = por %p709_p7, %p708_p6 }
 0x549   : > { %p711_p10 = pnand %p710_p8, %p704_p5 }
 0x54b   : > { %714 = shalt.err (!%p711_p10)
}
 0x54c   : > { %s715_s16 = scalar_lea.hbm %s935_s7, 128  ;;  %s719_s26 = scalar_lea.hbm %s989_s3, 256 }
 0x54d   : > { %p716_p11 = scmp.ne.s32.totalorder %s935_s7, %s715_s16  ;;  %p720_p0 = scmp.lt.u32.totalorder %s935_s7, %s989_s3 }
 0x54e   : > { %p721_p1 = scmp.lt.u32.totalorder %s719_s26, %s715_s16  ;;  %p723_p4 = scmp.lt.u32.totalorder %s715_s16, %s935_s7 }
 0x54f   : > { %p717_p12 = pnand %p716_p11, %p872_p3 }
 0x550   : > { %p722_p2 = por %p721_p1, %p720_p0 }
 0x551   : > { %p718_p13 = pneg %p717_p12 }
 0x552   : > { %p724_p5 = por %p723_p4, %p722_p2 }
 0x554   : > { %p725_p6 = pnand %p724_p5, %p718_p13 }
 0x556   : > { %728 = shalt.err (!%p725_p6)
}
 0x557   : > { %619 = dma.vmem_to_hbm [thread:$0]  (%p872_p3), %s468_s8, 128, %s935_s7, %s454_s9  }
 0x558 PF: > { %p625_p7 = scmp.ge.s32.totalorder %s795_s19, 2  ;;  %s479_s4 = sand.u32 1, %s767_s12  }
 0x559   : > { %s480_s29 = scalar_lea.sflag [#allocation4], %s479_s4 }
 0x55a   : > { %p622_p8 = pnand %p625_p7, %p882_p9 }
 0x55c   : > { %762 = dma.done.wait (!%p622_p8), %s480_s29, 128  }
 0x55d   : > { %764 = vsyncadd (!%p622_p8), %s480_s29, 4294967168  ;;  %s16_s19 = sadd.s32 1, %s795_s19   ;;  %s997_s24 = sld [smem:[#allocation6_spill]] }
 0x55e   : > { %p13_p10 = scmp.ge.s32.totalorder %s16_s19, 10   ;;  %s998_s5 = sld [smem:[#allocation7_spill]] }
 0x55f   : > { %s999_s12 = smov %s771_s13  ;;  %s1000_s13 = smov %s775_s14 }
 0x560   : > { %s1001_s14 = smov %s890_s28  ;;  %s1002_s15 = smov %s787_s17 }
 0x561   : > { %s1003_s16 = smov %s791_s18  ;;  %15 = sbr.rel (!%p13_p10) target bundleno = 5 (0x5), region = 81 }
 0x563   : > { %s1004_s17 = smov %s997_s24 }
 0x564   : > { %s1005_s18 = smov %s998_s5 }
 0x568   :  { %485 = vsyncpa [#allocation4], 1 }
 0x569   :  { %487 = vsyncpa [#allocation4 + $0x1], 1 }

</bundles_post_ra>
